<compile_context>
chip_gen: v7x
topology: tpu7x:2x2x1
jax: 0.10.0
libtpu: 0.0.40
codegen_flags: <defaults>
</compile_context>

<pallas_src>
import functools

import jax
import jax.numpy as jnp
from jax.experimental import pallas as pl
from jax.experimental.pallas import tpu as pltpu

BN_EPS = 1e-5
LANES = 128
SUBLANES = 8


def _round_up(x, m):
    return ((x + m - 1) // m) * m


def _vmem_capacity_bytes():
    """Physical VMEM of the attached TPU (per TensorCore); conservative fallback."""
    try:
        info = pltpu.get_tpu_info()
        cap = getattr(info, "vmem_capacity_bytes", None)
        if cap:
            return int(cap)
    except Exception:
        pass
    return 64 * 1024 * 1024  # v7x per-TC VMEM; v5e/v6e have 128 MiB


# ---------------------------------------------------------------------------
# Kernels
# ---------------------------------------------------------------------------
def _make_fused_kernel(num_layers):
    """Whole forward pass in one kernel: A_hat, x and all folded weights resident in VMEM."""
    def kernel(*refs):
        # refs = (a_ref, x_ref, w_0, b_0, ..., w_{L-1}, b_{L-1}, o_ref)
        a_ref, x_ref = refs[0], refs[1]
        o_ref = refs[-1]
        wb = refs[2:-1]
        a = a_ref[...]                       # (Np, Np)  compute dtype
        h = x_ref[...]                       # (Np, F0p) f32 activations
        for li in range(num_layers):
            w = wb[2 * li][...]              # (f_in_p, f_out_p) f32 (BN / FC already folded)
            b = wb[2 * li + 1][...]          # (1, f_out_p)      f32
            # Small feature matmul stays f32; only the N^2 matmul operands use compute dtype.
            z = jnp.dot(h, w, preferred_element_type=jnp.float32)
            h = jnp.dot(a, z.astype(a.dtype), preferred_element_type=jnp.float32) + b
            if li < num_layers - 1:
                h = jnp.maximum(h, 0.0)      # BN folded; eval-mode dropout = identity
        o_ref[...] = h                       # lane-dense f32 output slab
    return kernel


def _tiled_layer_kernel(a_ref, z_ref, b_ref, o_ref, *, apply_relu):
    """One GCN layer on one (TM, Np) row tile of A_hat: o = [relu](A_tile @ z + b)."""
    acc = jnp.dot(a_ref[...], z_ref[...], preferred_element_type=jnp.float32)
    acc = acc + b_ref[...]
    if apply_relu:
        acc = jnp.maximum(acc, 0.0)
    o_ref[...] = acc


def _tiled_layer(a_c, z, b, tm, apply_relu, vmem_cap):
    """Row-tiled pallas_call for one layer: A streamed, z (pre-aggregation features) resident."""
    n_pad = a_c.shape[0]
    f_out = z.shape[1]
    dtb = jnp.dtype(a_c.dtype).itemsize
    grid = (n_pad // tm,)
    # Per-step VMEM: double-buffered A row tiles + resident z (constant block index) +
    # double-buffered output tiles + bias.
    per_step = (2 * tm * n_pad * dtb + n_pad * f_out * dtb
                + 2 * tm * f_out * 4 + 2 * f_out * 4)
    vmem_limit = int(min(max(per_step * 1.25 + (4 << 20), 16 << 20), 0.9 * vmem_cap))
    cost = pl.CostEstimate(
        flops=int(2 * n_pad * n_pad * f_out),
        transcendentals=0,
        bytes_accessed=int(n_pad * n_pad * dtb + n_pad * f_out * (dtb + 4)),
    )
    return pl.pallas_call(
        functools.partial(_tiled_layer_kernel, apply_relu=apply_relu),
        grid=grid,
        in_specs=[
            pl.BlockSpec((tm, n_pad), lambda i: (i, 0)),     # A row tile (streamed HBM->VMEM)
            pl.BlockSpec((n_pad, f_out), lambda i: (0, 0)),  # z: constant block -> resident
            pl.BlockSpec((1, f_out), lambda i: (0, 0)),      # bias
        ],
        out_specs=pl.BlockSpec((tm, f_out), lambda i: (i, 0)),
        out_shape=jax.ShapeDtypeStruct((n_pad, f_out), jnp.float32),
        compiler_params=pltpu.CompilerParams(
            dimension_semantics=("parallel",),               # v7x: 2 TCs split the A rows
            vmem_limit_bytes=vmem_limit),
        cost_estimate=cost,
    )(a_c, z, b)


def _pick_row_tile(n_pad_est, f_out_max, dtb, vmem_cap):
    """Largest row tile whose double-buffered A tiles + resident z fit the per-gen VMEM."""
    budget = 0.6 * vmem_cap
    for tm in (1024, 512, 256, 128, 64, 32, 16, 8):
        per_step = (2 * tm * n_pad_est * dtb + n_pad_est * f_out_max * dtb
                    + 2 * tm * f_out_max * 4)
        if per_step <= budget:
            return tm
    return 8


# ---------------------------------------------------------------------------
# Constant folding (BN + FC head) and lane padding
# ---------------------------------------------------------------------------
def _fold_params(params, num_layers):
    """Fold eval-mode BN into each hidden conv, fold the FC head into the last conv,
    then zero-pad every feature dim up to a multiple of 128 lanes (layout-only, exact)."""
    folded = []
    for li in range(num_layers):
        w, b = params["convs"][li]
        w = w.astype(jnp.float32)
        b = b.astype(jnp.float32)
        if li < num_layers - 1:
            gamma, beta, mean, var = params["bns"][li]
            s = gamma * jax.lax.rsqrt(var + BN_EPS)
            w = w * s[None, :]
            b = (b - mean) * s + beta
        folded.append([w, b])

    # FC head folded into the last conv (linear o linear is exact).
    w_fc, b_fc = params["fc"]
    w_fc = w_fc.astype(jnp.float32)
    b_fc = b_fc.astype(jnp.float32)
    w_last, b_last = folded[-1]
    folded[-1] = [w_last @ w_fc, b_last @ w_fc + b_fc]

    padded = []
    for w, b in folded:
        fi = _round_up(w.shape[0], LANES)
        fo = _round_up(w.shape[1], LANES)
        w_p = jnp.pad(w, ((0, fi - w.shape[0]), (0, fo - w.shape[1])))
        b_p = jnp.pad(b, (0, fo - b.shape[0])).reshape(1, fo)
        padded.append((w_p, b_p))
    return padded


# ---------------------------------------------------------------------------
# Forward wrapper
# ---------------------------------------------------------------------------
@functools.partial(jax.jit,
                   static_argnames=("num_layers", "compute_dtype", "force_tiled", "row_tile"))
def large_gcn_forward(x, a_hat, params, num_layers,
                      compute_dtype=jnp.bfloat16, force_tiled=False, row_tile=None):
    """Eval-mode LargeGCN forward. Chooses fused (A resident in VMEM, one pallas_call)
    vs. row-tiled/streamed-A (per-layer pallas_call, row axis parallel) per VMEM budget."""
    folded = _fold_params(params, num_layers)
    num_out = params["fc"][0].shape[1]
    n = a_hat.shape[0]
    f0 = x.shape[1]
    f0_pad = folded[0][0].shape[0]
    k_pad = folded[-1][0].shape[1]
    dtb = jnp.dtype(compute_dtype).itemsize
    vmem_cap = _vmem_capacity_bytes()

    # Footprint of the fully fused design (A + x + folded params + output + live temps).
    n8 = _round_up(n, SUBLANES)
    param_bytes = sum(w.size * 4 + b.size * 4 for w, b in folded)
    fused_bytes = (n8 * n8 * dtb + n8 * f0_pad * 4 + param_bytes
                   + n8 * k_pad * 4 + 3 * n8 * LANES * 4)
    fused_limit = int(max(fused_bytes * 1.3 + (4 << 20), 16 << 20))
    use_fused = (not force_tiled) and fused_limit <= int(0.9 * vmem_cap)

    if use_fused:
        a_p = jnp.pad(a_hat, ((0, n8 - n), (0, n8 - n))).astype(compute_dtype)
        x_p = jnp.pad(x, ((0, n8 - n), (0, f0_pad - f0))).astype(jnp.float32)
        args = [a_p, x_p]
        flops = 0
        for w, b in folded:
            args.extend([w, b])
            flops += 2 * n8 * w.shape[0] * w.shape[1] + 2 * n8 * n8 * w.shape[1]
        cost = pl.CostEstimate(
            flops=int(flops), transcendentals=0,
            bytes_accessed=int(n8 * n8 * dtb + n8 * f0_pad * 4 + param_bytes + n8 * k_pad * 4))
        out = pl.pallas_call(
            _make_fused_kernel(num_layers),
            out_shape=jax.ShapeDtypeStruct((n8, k_pad), jnp.float32),
            in_specs=[pl.BlockSpec(memory_space=pltpu.MemorySpace.VMEM)] * len(args),
            out_specs=pl.BlockSpec(memory_space=pltpu.MemorySpace.VMEM),
            compiler_params=pltpu.CompilerParams(vmem_limit_bytes=fused_limit),
            cost_estimate=cost,
        )(*args)
    else:
        f_out_max = max(w.shape[1] for w, _ in folded)
        tm = row_tile if row_tile is not None else _pick_row_tile(n8, f_out_max, dtb, vmem_cap)
        tm = min(tm, _round_up(n, SUBLANES))
        n_pad = _round_up(n, tm)
        a_c = jnp.pad(a_hat, ((0, n_pad - n), (0, n_pad - n))).astype(compute_dtype)
        h = jnp.pad(x, ((0, n_pad - n), (0, f0_pad - f0))).astype(jnp.float32)
        for li in range(num_layers):
            w, b = folded[li]
            # Small feature matmul hoisted (once per layer, not per row tile); f32 for accuracy.
            z = jnp.dot(h, w, preferred_element_type=jnp.float32).astype(compute_dtype)
            h = _tiled_layer(a_c, z, b, tm, apply_relu=(li < num_layers - 1),
                             vmem_cap=vmem_cap)
        out = h

    out = out[:n, :num_out]                  # drop row / lane padding
    if num_out == 1:
        out = jnp.squeeze(out, axis=1)       # matches .squeeze(1) in the module
    return out


# ---------------------------------------------------------------------------
# Glue: normalized adjacency, parameters, pure-JAX reference
# ---------------------------------------------------------------------------
def normalized_adjacency(edge_index, num_nodes):
    """A_hat = D^{-1/2} (A + I) D^{-1/2}, matching GCNConv's gcn_norm (duplicate edges sum,
    self-loops added only for nodes that do not already have one)."""
    src, dst = edge_index[0], edge_index[1]
    adj = jnp.zeros((num_nodes, num_nodes), jnp.float32)
    adj = adj.at[dst, src].add(1.0)
    diag = jnp.diagonal(adj)
    adj = adj + jnp.diag(jnp.where(diag > 0.0, 0.0, 1.0))
    deg = adj.sum(axis=1)
    d_inv_sqrt = jnp.where(deg > 0, jax.lax.rsqrt(deg), 0.0)
    return d_inv_sqrt[:, None] * adj * d_inv_sqrt[None, :]


def init_params(key, num_node_features, hidden_dim, output_dim,
                num_out_features, num_layers):
    """Deterministic synthetic parameters mirroring LargeGCN.__init__ shapes."""
    dims = [num_node_features] + [hidden_dim] * (num_layers - 1) + [output_dim]
    params = {"convs": [], "bns": []}
    for li in range(num_layers):
        key, kw = jax.random.split(key)
        f_in, f_out = dims[li], dims[li + 1]
        scale = (6.0 / (f_in + f_out)) ** 0.5
        w = jax.random.uniform(kw, (f_in, f_out), jnp.float32, -scale, scale)
        b = jnp.zeros((f_out,), jnp.float32)
        params["convs"].append((w, b))
        if li < num_layers - 1:
            params["bns"].append((jnp.ones((f_out,), jnp.float32),    # gamma
                                  jnp.zeros((f_out,), jnp.float32),   # beta
                                  jnp.zeros((f_out,), jnp.float32),   # running_mean
                                  jnp.ones((f_out,), jnp.float32)))   # running_var
    key, kf = jax.random.split(key)
    scale = (1.0 / output_dim) ** 0.5
    w_fc = jax.random.uniform(kf, (output_dim, num_out_features), jnp.float32, -scale, scale)
    b_fc = jnp.zeros((num_out_features,), jnp.float32)
    params["fc"] = (w_fc, b_fc)
    return params


def large_gcn_reference(x, a_hat, params, num_layers):
    """Un-folded pure-JAX reference of the eval-mode forward pass."""
    h = x
    for i in range(num_layers - 1):
        w, b = params["convs"][i]
        gamma, beta, mean, var = params["bns"][i]
        h = a_hat @ (h @ w) + b
        h = (h - mean) * jax.lax.rsqrt(var + BN_EPS) * gamma + beta
        h = jnp.maximum(h, 0.0)
    w, b = params["convs"][-1]
    w_fc, b_fc = params["fc"]
    h = a_hat @ (h @ w) + b
    return jnp.squeeze(h @ w_fc + b_fc, axis=1)


# ---------------------------------------------------------------------------
if __name__ == "__main__":
    NUM_NODES = 32
    NUM_EDGES = 64
    NUM_NODE_FEATURES = 8
    HIDDEN_DIM = 32
    OUTPUT_DIM = 16
    NUM_OUT_FEATURES = 1      # .squeeze(1) in the module implies a single output feature
    NUM_LAYERS = 3

    key = jax.random.PRNGKey(0)
    kx, ke1, ke2, kp = jax.random.split(key, 4)

    x = jax.random.normal(kx, (NUM_NODES, NUM_NODE_FEATURES), jnp.float32)
    src = jax.random.randint(ke1, (NUM_EDGES,), 0, NUM_NODES)
    dst = jax.random.randint(ke2, (NUM_EDGES,), 0, NUM_NODES)
    edge_index = jnp.stack([src, dst], axis=0)

    a_hat = normalized_adjacency(edge_index, NUM_NODES)
    params = init_params(kp, NUM_NODE_FEATURES, HIDDEN_DIM, OUTPUT_DIM,
                         NUM_OUT_FEATURES, NUM_LAYERS)

    with jax.default_matmul_precision("highest"):
        ref = large_gcn_reference(x, a_hat, params, NUM_LAYERS)
    jax.block_until_ready(ref)

    # 1) Fused path, f32 compute: only folding / padding differences -> tight tolerance.
    out_f32 = large_gcn_forward(x, a_hat, params, NUM_LAYERS, compute_dtype=jnp.float32)
    jax.block_until_ready(out_f32)
    assert out_f32.shape == (NUM_NODES,), out_f32.shape
    assert jnp.allclose(out_f32, ref, rtol=2e-3, atol=2e-3), \
        float(jnp.max(jnp.abs(out_f32 - ref)))

    # 2) Fused path, default bf16 A_hat / N^2-matmul operands: loose tolerance.
    out_bf16 = large_gcn_forward(x, a_hat, params, NUM_LAYERS)
    jax.block_until_ready(out_bf16)
    assert out_bf16.shape == (NUM_NODES,), out_bf16.shape
    assert jnp.allclose(out_bf16, ref, rtol=5e-2, atol=5e-2), \
        float(jnp.max(jnp.abs(out_bf16 - ref)))

    # 3) Row-tiled / streamed-A path forced at small size (exercises the large-N code path,
    #    grid=(2,), row axis "parallel").
    out_tiled = large_gcn_forward(x, a_hat, params, NUM_LAYERS,
                                  compute_dtype=jnp.float32, force_tiled=True, row_tile=16)
    jax.block_until_ready(out_tiled)
    assert out_tiled.shape == (NUM_NODES,), out_tiled.shape
    assert jnp.allclose(out_tiled, ref, rtol=2e-3, atol=2e-3), \
        float(jnp.max(jnp.abs(out_tiled - ref)))

    print("KERNEL_OK")
</pallas_src>

<mosaic_0001>
module attributes {stable_mosaic.version = 11 : i64} {
  func.func @kernel(%arg0: memref<32x32xf32, #tpu.memory_space<vmem>>, %arg1: memref<32x128xf32, #tpu.memory_space<vmem>>, %arg2: memref<128x128xf32, #tpu.memory_space<vmem>>, %arg3: memref<1x128xf32, #tpu.memory_space<vmem>>, %arg4: memref<128x128xf32, #tpu.memory_space<vmem>>, %arg5: memref<1x128xf32, #tpu.memory_space<vmem>>, %arg6: memref<128x128xf32, #tpu.memory_space<vmem>>, %arg7: memref<1x128xf32, #tpu.memory_space<vmem>>, %arg8: memref<32x128xf32, #tpu.memory_space<vmem>>) attributes {dimension_semantics = [], scalar_prefetch = 0 : i64, scratch_operands = 0 : i64, tpu.core_type = #tpu.core_type<tc>} {
    %c0 = arith.constant 0 : index
    %c0_0 = arith.constant 0 : index
    %0 = vector.load %arg0[%c0, %c0_0] : memref<32x32xf32, #tpu.memory_space<vmem>>, vector<32x32xf32>
    %c0_1 = arith.constant 0 : index
    %c0_2 = arith.constant 0 : index
    %1 = vector.load %arg1[%c0_1, %c0_2] : memref<32x128xf32, #tpu.memory_space<vmem>>, vector<32x128xf32>
    %c0_3 = arith.constant 0 : index
    %c0_4 = arith.constant 0 : index
    %2 = vector.load %arg2[%c0_3, %c0_4] : memref<128x128xf32, #tpu.memory_space<vmem>>, vector<128x128xf32>
    %c0_5 = arith.constant 0 : index
    %c0_6 = arith.constant 0 : index
    %3 = vector.load %arg3[%c0_5, %c0_6] : memref<1x128xf32, #tpu.memory_space<vmem>>, vector<1x128xf32>
    %cst = arith.constant dense<0.000000e+00> : vector<32x128xf32>
    %4 = tpu.matmul %1, %2, %cst {dimension_numbers = #tpu.dot_dimension_numbers<[1], [0], [0], [1], [0, 0, 1, 1], [], []>} : vector<32x128xf32>, vector<128x128xf32>, vector<32x128xf32> -> vector<32x128xf32>
    %cst_7 = arith.constant dense<0.000000e+00> : vector<32x128xf32>
    %5 = tpu.matmul %0, %4, %cst_7 {dimension_numbers = #tpu.dot_dimension_numbers<[1], [0], [0], [1], [0, 0, 1, 1], [], []>} : vector<32x32xf32>, vector<32x128xf32>, vector<32x128xf32> -> vector<32x128xf32>
    %6 = vector.broadcast %3 : vector<1x128xf32> to vector<32x128xf32>
    %7 = arith.addf %5, %6 : vector<32x128xf32>
    %cst_8 = arith.constant 0.000000e+00 : f32
    %8 = vector.broadcast %cst_8 : f32 to vector<32x128xf32>
    %9 = arith.maximumf %7, %8 : vector<32x128xf32>
    %c0_9 = arith.constant 0 : index
    %c0_10 = arith.constant 0 : index
    %10 = vector.load %arg4[%c0_9, %c0_10] : memref<128x128xf32, #tpu.memory_space<vmem>>, vector<128x128xf32>
    %c0_11 = arith.constant 0 : index
    %c0_12 = arith.constant 0 : index
    %11 = vector.load %arg5[%c0_11, %c0_12] : memref<1x128xf32, #tpu.memory_space<vmem>>, vector<1x128xf32>
    %cst_13 = arith.constant dense<0.000000e+00> : vector<32x128xf32>
    %12 = tpu.matmul %9, %10, %cst_13 {dimension_numbers = #tpu.dot_dimension_numbers<[1], [0], [0], [1], [0, 0, 1, 1], [], []>} : vector<32x128xf32>, vector<128x128xf32>, vector<32x128xf32> -> vector<32x128xf32>
    %cst_14 = arith.constant dense<0.000000e+00> : vector<32x128xf32>
    %13 = tpu.matmul %0, %12, %cst_14 {dimension_numbers = #tpu.dot_dimension_numbers<[1], [0], [0], [1], [0, 0, 1, 1], [], []>} : vector<32x32xf32>, vector<32x128xf32>, vector<32x128xf32> -> vector<32x128xf32>
    %14 = vector.broadcast %11 : vector<1x128xf32> to vector<32x128xf32>
    %15 = arith.addf %13, %14 : vector<32x128xf32>
    %cst_15 = arith.constant 0.000000e+00 : f32
    %16 = vector.broadcast %cst_15 : f32 to vector<32x128xf32>
    %17 = arith.maximumf %15, %16 : vector<32x128xf32>
    %c0_16 = arith.constant 0 : index
    %c0_17 = arith.constant 0 : index
    %18 = vector.load %arg6[%c0_16, %c0_17] : memref<128x128xf32, #tpu.memory_space<vmem>>, vector<128x128xf32>
    %c0_18 = arith.constant 0 : index
    %c0_19 = arith.constant 0 : index
    %19 = vector.load %arg7[%c0_18, %c0_19] : memref<1x128xf32, #tpu.memory_space<vmem>>, vector<1x128xf32>
    %cst_20 = arith.constant dense<0.000000e+00> : vector<32x128xf32>
    %20 = tpu.matmul %17, %18, %cst_20 {dimension_numbers = #tpu.dot_dimension_numbers<[1], [0], [0], [1], [0, 0, 1, 1], [], []>} : vector<32x128xf32>, vector<128x128xf32>, vector<32x128xf32> -> vector<32x128xf32>
    %cst_21 = arith.constant dense<0.000000e+00> : vector<32x128xf32>
    %21 = tpu.matmul %0, %20, %cst_21 {dimension_numbers = #tpu.dot_dimension_numbers<[1], [0], [0], [1], [0, 0, 1, 1], [], []>} : vector<32x32xf32>, vector<32x128xf32>, vector<32x128xf32> -> vector<32x128xf32>
    %22 = vector.broadcast %19 : vector<1x128xf32> to vector<32x128xf32>
    %23 = arith.addf %21, %22 : vector<32x128xf32>
    %c0_22 = arith.constant 0 : index
    %c0_23 = arith.constant 0 : index
    %24 = vector.load %arg8[%c0_22, %c0_23] : memref<32x128xf32, #tpu.memory_space<vmem>>, vector<32x128xf32>
    tpu.vector_store %arg8[%c0_22, %c0_23], %23 {strides = array<i32>} : memref<32x128xf32, #tpu.memory_space<vmem>>, vector<32x128xf32>,
    return
  }
}

</mosaic_0001>

<bundles_post_ra>
// kernel: large_gcn_forward.1
= control target key start
LH: loop header
LB: loop body
LE: loop exit
PB: predicated region body
PF: predicated region fallthrough
CT: control target
= control target key end

     0   :  { %vm145_vm0 = vcmask 261120   ;;  %s1286_s2 = inlined_call_operand.vmem [shape: f32[128,128], index: 2, kind: input, shape index: {}]   ;;  %s1287_s1 = inlined_call_operand.vmem [shape: f32[32,128], index: 1, kind: input, shape index: {}]   ;;  %s1288_s0 = inlined_call_operand.vmem [shape: f32[32,32], index: 0, kind: input, shape index: {}]   ;;  %s1289_s4 = inlined_call_operand.vmem [shape: f32[128,128], index: 4, kind: input, shape index: {}]   ;;  %s1290_s3 = inlined_call_operand.vmem [shape: f32[1,128], index: 3, kind: input, shape index: {}]   ;;  %s1291_s6 = inlined_call_operand.vmem [shape: f32[128,128], index: 6, kind: input, shape index: {}]   ;;  %s1292_s5 = inlined_call_operand.vmem [shape: f32[1,128], index: 5, kind: input, shape index: {}]   ;;  %s1293_s7 = inlined_call_operand.vmem [shape: f32[1,128], index: 7, kind: input, shape index: {}]   ;;  %s1294_s8 = inlined_call_operand.vmem [shape: f32[32,128], index: 8, kind: output, shape index: {}]  }
   0x1   :  { %v37_v0 = vld [vmem:[%s1286_s2] sm:$0xff]  ;;  %v38_v1 = vld [vmem:[%s1286_s2 + $0x8] sm:$0xff]  ;;  %v39_v2 = vld [vmem:[%s1286_s2 + $0x10] sm:$0xff] }
   0x2   :  { %v900_v3 = vpack.c.bf16 %v38_v1, %v37_v0  ;;  %v40_v4 = vld [vmem:[%s1286_s2 + $0x18] sm:$0xff]  ;;  %v41_v6 = vld [vmem:[%s1286_s2 + $0x20] sm:$0xff]  ;;  %v42_v7 = vld [vmem:[%s1286_s2 + $0x28] sm:$0xff] }
   0x3   :  { %v904_v5 = vpack.c.bf16 %v40_v4, %v39_v2  ;;  %v908_v8 = vpack.c.bf16 %v42_v7, %v41_v6  ;;  %v33_v9 = vld [vmem:[%s1287_s1] sm:$0xff]  ;;  %v43_v10 = vld [vmem:[%s1286_s2 + $0x30] sm:$0xff]  ;;  %v44_v11 = vld [vmem:[%s1286_s2 + $0x38] sm:$0xff] }
   0x4   :  { %901 = vmatprep.subr.bf16.mxu0 %v900_v3  ;;  %776 = vmatprep.mubr.f32.mxu0 %v33_v9  ;;  %v912_v12 = vpack.c.bf16 %v44_v11, %v43_v10  ;;  %v45_v13 = vld [vmem:[%s1286_s2 + $0x40] sm:$0xff]  ;;  %v46_v14 = vld [vmem:[%s1286_s2 + $0x48] sm:$0xff]  ;;  %v47_v16 = vld [vmem:[%s1286_s2 + $0x50] sm:$0xff] }
   0x5   :  { %903 = vmatpush3.bf16.msra.mxu0 %v900_v3  ;;  %v916_v15 = vpack.c.bf16 %v46_v14, %v45_v13  ;;  %v48_v17 = vld [vmem:[%s1286_s2 + $0x58] sm:$0xff]  ;;  %v49_v19 = vld [vmem:[%s1286_s2 + $0x60] sm:$0xff]  ;;  %v50_v20 = vld [vmem:[%s1286_s2 + $0x68] sm:$0xff] }
   0x6   :  { %905 = vmatprep.subr.bf16.mxu0 %v904_v5  ;;  %v920_v18 = vpack.c.bf16 %v48_v17, %v47_v16  ;;  %v924_v21 = vpack.c.bf16 %v50_v20, %v49_v19  ;;  %v51_v22 = vld [vmem:[%s1286_s2 + $0x70] sm:$0xff]  ;;  %v52_v23 = vld [vmem:[%s1286_s2 + $0x78] sm:$0xff]  ;;  %v34_v25 = vld [vmem:[%s1287_s1 + $0x8] sm:$0xff] }
   0x7   :  { %v928_v24 = vpack.c.bf16 %v52_v23, %v51_v22  ;;  %v35_v26 = vld [vmem:[%s1287_s1 + $0x10] sm:$0xff]  ;;  %v36_v27 = vld [vmem:[%s1287_s1 + $0x18] sm:$0xff]  ;;  %v1128_v28 = vld [vmem:[%s1288_s0] sm:$0xff] }
   0x8   :  { %790 = vmatprep.mubr.msk.f32.mxu1 %vm145_vm0, %v1128_v28  ;;  %v247_v32 = vld [vmem:[%s1289_s4] sm:$0xff]  ;;  %v248_v33 = vld [vmem:[%s1289_s4 + $0x8] sm:$0xff]  ;;  %v249_v38 = vld [vmem:[%s1289_s4 + $0x10] sm:$0xff] }
   0x9   :  { %907 = vmatpush3.bf16.msra.mxu0 %v904_v5  ;;  %v940_v37 = vpack.c.bf16 %v248_v33, %v247_v32  ;;  %v250_v39 = vld [vmem:[%s1289_s4 + $0x18] sm:$0xff]  ;;  %v1147_v40 = vld [vmem:[%s1288_s0 + $0x8] sm:$0xff]  ;;  %v1152_v41 = vld [vmem:[%s1288_s0 + $0x10] sm:$0xff] }
   0xa   :  { %909 = vmatprep.subr.bf16.mxu0 %v908_v8  ;;  %v944_v42 = vpack.c.bf16 %v250_v39, %v249_v38  ;;  %v251_v43 = vld [vmem:[%s1289_s4 + $0x20] sm:$0xff]  ;;  %v252_v44 = vld [vmem:[%s1289_s4 + $0x28] sm:$0xff]  ;;  %v1167_v45 = vld [vmem:[%s1288_s0 + $0x18] sm:$0xff] }
   0xb   :  { %v948_v46 = vpack.c.bf16 %v252_v44, %v251_v43  ;;  %v253_v47 = vld [vmem:[%s1289_s4 + $0x30] sm:$0xff]  ;;  %v254_v48 = vld [vmem:[%s1289_s4 + $0x38] sm:$0xff]  ;;  %v255_v50 = vld [vmem:[%s1289_s4 + $0x40] sm:$0xff] }
   0xc   :  { %v952_v49 = vpack.c.bf16 %v254_v48, %v253_v47  ;;  %v256_v51 = vld [vmem:[%s1289_s4 + $0x48] sm:$0xff]  ;;  %v257_v53 = vld [vmem:[%s1289_s4 + $0x50] sm:$0xff]  ;;  %v258_v54 = vld [vmem:[%s1289_s4 + $0x58] sm:$0xff] }
   0xd   :  { %911 = vmatpush3.bf16.msra.mxu0 %v908_v8  ;;  %v956_v52 = vpack.c.bf16 %v256_v51, %v255_v50  ;;  %v960_v55 = vpack.c.bf16 %v258_v54, %v257_v53  ;;  %v259_v56 = vld [vmem:[%s1289_s4 + $0x60] sm:$0xff]  ;;  %v260_v57 = vld [vmem:[%s1289_s4 + $0x68] sm:$0xff]  ;;  %v261_v59 = vld [vmem:[%s1289_s4 + $0x70] sm:$0xff] }
   0xe   :  { %913 = vmatprep.subr.bf16.mxu0 %v912_v12  ;;  %v964_v58 = vpack.c.bf16 %v260_v57, %v259_v56  ;;  %v262_v60 = vld [vmem:[%s1289_s4 + $0x78] sm:$0xff]  ;;  %v645_v62 = vld [vmem:[%s1290_s3] ss:$0 sm:$0xff]  ;;  %v446_v13 = vld [vmem:[%s1291_s6 + $0x10] sm:$0xff] }
   0xf   :  { %v968_v61 = vpack.c.bf16 %v262_v60, %v261_v59  ;;  %v444_v11 = vld [vmem:[%s1291_s6] sm:$0xff]  ;;  %v450_v20 = vld [vmem:[%s1291_s6 + $0x30] sm:$0xff] }
  0x10   :  { %v448_v17 = vld [vmem:[%s1291_s6 + $0x20] sm:$0xff]  ;;  %v458_v39 = vld [vmem:[%s1291_s6 + $0x70] sm:$0xff] }
  0x11   :  { %915 = vmatpush3.bf16.msra.mxu0 %v912_v12  ;;  %v445_v12 = vld [vmem:[%s1291_s6 + $0x8] sm:$0xff]  ;;  %v452_v23 = vld [vmem:[%s1291_s6 + $0x40] sm:$0xff] }
  0x12   :  { %917 = vmatprep.subr.bf16.mxu0 %v916_v15  ;;  %v980_v14 = vpack.c.bf16 %v445_v12, %v444_v11  ;;  %v650_v44 = vld [vmem:[%s1292_s5] ss:$0 sm:$0xff] }
  0x15   :  { %919 = vmatpush3.bf16.msra.mxu0 %v916_v15  ;;  %v447_v15 = vld [vmem:[%s1291_s6 + $0x18] sm:$0xff] }
  0x16   :  { %921 = vmatprep.subr.bf16.mxu0 %v920_v18  ;;  %v984_v16 = vpack.c.bf16 %v447_v15, %v446_v13 }
  0x19   :  { %923 = vmatpush3.bf16.msra.mxu0 %v920_v18  ;;  %v449_v18 = vld [vmem:[%s1291_s6 + $0x28] sm:$0xff] }
  0x1a   :  { %925 = vmatprep.subr.bf16.mxu0 %v924_v21  ;;  %v988_v19 = vpack.c.bf16 %v449_v18, %v448_v17 }
  0x1d   :  { %927 = vmatpush3.bf16.msra.mxu0 %v924_v21  ;;  %v451_v21 = vld [vmem:[%s1291_s6 + $0x38] sm:$0xff] }
  0x1e   :  { %929 = vmatprep.subr.bf16.mxu0 %v928_v24  ;;  %v992_v22 = vpack.c.bf16 %v451_v21, %v450_v20 }
  0x21   :  { %931 = vmatpush3.bf16.msra.mxu0 %v928_v24  ;;  %v453_v24 = vld [vmem:[%s1291_s6 + $0x48] sm:$0xff] }
  0x22   :  { %981 = vmatprep.subr.bf16.mxu0 %v980_v14 }
  0x24   :  { %777 = vmatmul.mubr.f32.vlgmr.msra.gmra.mrb[0].mxu0 %v34_v25  ;;  %v996_v25 = vpack.c.bf16 %v453_v24, %v452_v23 }
  0x25   :  { %779 = vmatprep.mubr.f32.mxu0 %v35_v26  ;;  %983 = vmatpush3.bf16.msra.mxu0 %v980_v14  ;;  %v454_v26 = vld [vmem:[%s1291_s6 + $0x50] sm:$0xff] }
  0x26   :  { %985 = vmatprep.subr.bf16.mxu0 %v984_v16 }
  0x28   :  { %780 = vmatmul.mubr.f32.gmra.mrb[2].mxu0 %v36_v27  ;;  %v455_v27 = vld [vmem:[%s1291_s6 + $0x58] sm:$0xff] }
  0x29   :  { %987 = vmatpush3.bf16.msra.mxu0 %v984_v16 }
  0x2a   :  { %989 = vmatprep.subr.bf16.mxu0 %v988_v19 }
  0x2d   :  { %991 = vmatpush3.bf16.msra.mxu0 %v988_v19 }
  0x2e   :  { %993 = vmatprep.subr.bf16.mxu0 %v992_v22 }
  0x31   :  { %995 = vmatpush3.bf16.msra.mxu0 %v992_v22 }
  0x32   :  { %997 = vmatprep.subr.bf16.mxu0 %v996_v25 }
  0x35   :  { %999 = vmatpush3.bf16.msra.mxu0 %v996_v25 }
  0xf7   :  { %v778_v29 = vpop.f32.mrb[0].mxu0 }
  0xf8   :  { %v120_v30 = vpop.f32.mrb[1].mxu0 }
  0xf9   :  { %v932_v31 = vpack.c.bf16 %v778_v29, %v120_v30  ;;  %v1000_v29 = vpack.c.bf16 %v455_v27, %v454_v26  ;;  %v456_v30 = vld [vmem:[%s1291_s6 + $0x60] sm:$0xff] }
  0xfb   :  { %v781_v34 = vpop.f32.mrb[2].mxu0  ;;  %933 = vmatprep.subr.bf16.mxu1 %v932_v31  ;;  %1001 = vmatprep.subr.bf16.mxu0 %v1000_v29 }
  0xfc   :  { %v130_v35 = vpop.f32.mrb[3].mxu0  ;;  %935 = vmatpush3.bf16.msra.mxu1 %v932_v31  ;;  %v457_v31 = vld [vmem:[%s1291_s6 + $0x68] sm:$0xff]  ;;  %1003 = vmatpush3.bf16.msra.mxu0 %v1000_v29 }
  0xfd   :  { %v936_v36 = vpack.c.bf16 %v781_v34, %v130_v35  ;;  %v1004_v32 = vpack.c.bf16 %v457_v31, %v456_v30 }
  0xff   :  { %937 = vmatprep.subr.bf16.mxu1 %v936_v36  ;;  %1005 = vmatprep.subr.bf16.mxu0 %v1004_v32 }
 0x100   :  { %939 = vmatpush3.bf16.msra.mxu1 %v936_v36  ;;  %1007 = vmatpush3.bf16.msra.mxu0 %v1004_v32 }
 0x101   :  { %941 = vmatprep.subr.bf16.mxu1 %v940_v37 }
 0x103   :  { %791 = vmatmul.mubr.msk.f32.vlgmr.msra.gmra.mrb[0].mxu1 %vm145_vm0, %v1147_v40 }
 0x104   :  { %793 = vmatprep.mubr.msk.f32.mxu1 %vm145_vm0, %v1152_v41  ;;  %943 = vmatpush3.bf16.msra.mxu1 %v940_v37 }
 0x105   :  { %945 = vmatprep.subr.bf16.mxu1 %v944_v42 }
 0x107   :  { %794 = vmatmul.mubr.msk.f32.gmra.mrb[2].mxu1 %vm145_vm0, %v1167_v45 }
 0x108   :  { %947 = vmatpush3.bf16.msra.mxu1 %v944_v42  ;;  %v459_v42 = vld [vmem:[%s1291_s6 + $0x78] sm:$0xff] }
 0x109   :  { %949 = vmatprep.subr.bf16.mxu1 %v948_v46  ;;  %v1008_v43 = vpack.c.bf16 %v459_v42, %v458_v39 }
 0x10b   :  { %1009 = vmatprep.subr.bf16.mxu0 %v1008_v43 }
 0x10c   :  { %951 = vmatpush3.bf16.msra.mxu1 %v948_v46  ;;  %1011 = vmatpush3.bf16.msra.mxu0 %v1008_v43 }
 0x10d   :  { %953 = vmatprep.subr.bf16.mxu1 %v952_v49 }
 0x110   :  { %955 = vmatpush3.bf16.msra.mxu1 %v952_v49 }
 0x111   :  { %957 = vmatprep.subr.bf16.mxu1 %v956_v52 }
 0x114   :  { %959 = vmatpush3.bf16.msra.mxu1 %v956_v52 }
 0x115   :  { %961 = vmatprep.subr.bf16.mxu1 %v960_v55 }
 0x118   :  { %963 = vmatpush3.bf16.msra.mxu1 %v960_v55 }
 0x119   :  { %965 = vmatprep.subr.bf16.mxu1 %v964_v58 }
 0x11c   :  { %967 = vmatpush3.bf16.msra.mxu1 %v964_v58 }
 0x11d   :  { %969 = vmatprep.subr.bf16.mxu1 %v968_v61 }
 0x120   :  { %971 = vmatpush3.bf16.msra.mxu1 %v968_v61 }
 0x1d6   :  { %v792_v63 = vpop.f32.mrb[0].mxu1 }
 0x1d7   :  { %v230_v0 = vadd.f32 %v792_v63, %v645_v62  ;;  %v224_v1 = vpop.f32.mrb[1].mxu1  ;;  %v655_v63 = vld [vmem:[%s1293_s7] ss:$0 sm:$0xff] }
 0x1d8   :  { %v225_v2 = vadd.f32 %v645_v62, %v224_v1 }
 0x1d9   :  { %v244_v5 = vmax.f32 %v230_v0, 0.0 }
 0x1da   :  { %v243_v3 = vmax.f32 %v225_v2, 0.0  ;;  %v795_v4 = vpop.f32.mrb[2].mxu1 }
 0x1db   :  { %v240_v6 = vadd.f32 %v795_v4, %v645_v62  ;;  %v234_v7 = vpop.f32.mrb[3].mxu1 }
 0x1dc   :  { %v235_v8 = vadd.f32 %v645_v62, %v234_v7  ;;  %828 = vmatprep.mubr.f32.mxu1 %v243_v3 }
 0x1dd   :  { %829 = vmatmul.mubr.f32.vlgmr.msra.gmra.mrb[4].mxu1 %v244_v5  ;;  %v246_v10 = vmax.f32 %v240_v6, 0.0 }
 0x1de   :  { %v245_v9 = vmax.f32 %v235_v8, 0.0 }
 0x1e0   :  { %831 = vmatprep.mubr.f32.mxu1 %v245_v9 }
 0x1e1   :  { %832 = vmatmul.mubr.f32.gmra.mrb[6].mxu1 %v246_v10 }
 0x1e2   :  { %842 = vmatprep.mubr.msk.f32.mxu1 %vm145_vm0, %v1128_v28 }
 0x2b0   :  { %v830_v33 = vpop.f32.mrb[4].mxu1 }
 0x2b1   :  { %v330_v34 = vpop.f32.mrb[5].mxu1 }
 0x2b2   :  { %v972_v35 = vpack.c.bf16 %v830_v33, %v330_v34 }
 0x2b4   :  { %v833_v36 = vpop.f32.mrb[6].mxu1  ;;  %973 = vmatprep.subr.bf16.mxu1 %v972_v35 }
 0x2b5   :  { %v340_v37 = vpop.f32.mrb[7].mxu1  ;;  %975 = vmatpush3.bf16.msra.mxu1 %v972_v35 }
 0x2b6   :  { %v976_v38 = vpack.c.bf16 %v833_v36, %v340_v37 }
 0x2b8   :  { %977 = vmatprep.subr.bf16.mxu1 %v976_v38 }
 0x2b9   :  { %979 = vmatpush3.bf16.msra.mxu1 %v976_v38 }
 0x2bc   :  { %843 = vmatmul.mubr.msk.f32.vlgmr.msra.gmra.mrb[8].mxu1 %vm145_vm0, %v1147_v40 }
 0x2bd   :  { %845 = vmatprep.mubr.msk.f32.mxu1 %vm145_vm0, %v1152_v41 }
 0x2c0   :  { %846 = vmatmul.mubr.msk.f32.gmra.mrb[10].mxu1 %vm145_vm0, %v1167_v45 }
 0x2c1   :  { %894 = vmatprep.mubr.msk.f32.mxu1 %vm145_vm0, %v1128_v28 }
 0x38f   :  { %v844_v46 = vpop.f32.mrb[8].mxu1 }
 0x390   :  { %v427_v47 = vadd.f32 %v844_v46, %v650_v44  ;;  %v421_v48 = vpop.f32.mrb[9].mxu1 }
 0x391   :  { %v422_v49 = vadd.f32 %v650_v44, %v421_v48 }
 0x392   :  { %v441_v51 = vmax.f32 %v427_v47, 0.0 }
 0x393   :  { %v440_v28 = vmax.f32 %v422_v49, 0.0  ;;  %v847_v50 = vpop.f32.mrb[10].mxu1 }
 0x394   :  { %v437_v52 = vadd.f32 %v847_v50, %v650_v44  ;;  %v431_v53 = vpop.f32.mrb[11].mxu1 }
 0x395   :  { %v432_v54 = vadd.f32 %v650_v44, %v431_v53  ;;  %880 = vmatprep.mubr.f32.mxu0 %v440_v28 }
 0x396   :  { %881 = vmatmul.mubr.f32.vlgmr.msra.gmra.mrb[4].mxu0 %v441_v51  ;;  %v443_v56 = vmax.f32 %v437_v52, 0.0 }
 0x397   :  { %v442_v55 = vmax.f32 %v432_v54, 0.0 }
 0x399   :  { %883 = vmatprep.mubr.f32.mxu0 %v442_v55 }
 0x39a   :  { %884 = vmatmul.mubr.f32.gmra.mrb[6].mxu0 %v443_v56 }
 0x469   :  { %v882_v57 = vpop.f32.mrb[4].mxu0 }
 0x46a   :  { %v527_v58 = vpop.f32.mrb[5].mxu0 }
 0x46b   :  { %v1012_v59 = vpack.c.bf16 %v882_v57, %v527_v58 }
 0x46d   :  { %v885_v60 = vpop.f32.mrb[6].mxu0  ;;  %1013 = vmatprep.subr.bf16.mxu1 %v1012_v59 }
 0x46e   :  { %v537_v61 = vpop.f32.mrb[7].mxu0  ;;  %1015 = vmatpush3.bf16.msra.mxu1 %v1012_v59 }
 0x46f   :  { %v1016_v62 = vpack.c.bf16 %v885_v60, %v537_v61 }
 0x471   :  { %1017 = vmatprep.subr.bf16.mxu1 %v1016_v62 }
 0x472   :  { %1019 = vmatpush3.bf16.msra.mxu1 %v1016_v62 }
 0x475   :  { %895 = vmatmul.mubr.msk.f32.vlgmr.msra.gmra.mrb[12].mxu1 %vm145_vm0, %v1147_v40 }
 0x476   :  { %897 = vmatprep.mubr.msk.f32.mxu1 %vm145_vm0, %v1152_v41 }
 0x479   :  { %898 = vmatmul.mubr.msk.f32.gmra.mrb[14].mxu1 %vm145_vm0, %v1167_v45 }
 0x548   :  { %v896_v0 = vpop.f32.mrb[12].mxu1 }
 0x549   :  { %v624_v1 = vadd.f32 %v896_v0, %v655_v63  ;;  %v618_v2 = vpop.f32.mrb[13].mxu1 }
 0x54a   :  { %v619_v3 = vadd.f32 %v655_v63, %v618_v2 }
 0x54b   :  { %638 = vst [vmem:[%s1294_s8 + $0x8] sm:$0xff] %v624_v1 }
 0x54c   :  { %637 = vst [vmem:[%s1294_s8] sm:$0xff] %v619_v3  ;;  %v899_v40 = vpop.f32.mrb[14].mxu1 }
 0x54d   :  { %v634_v41 = vadd.f32 %v899_v40, %v655_v63  ;;  %v628_v4 = vpop.f32.mrb[15].mxu1 }
 0x54e   :  { %v629_v45 = vadd.f32 %v655_v63, %v628_v4 }
 0x54f   :  { %640 = vst [vmem:[%s1294_s8 + $0x18] sm:$0xff] %v634_v41 }
 0x550   :  { %639 = vst [vmem:[%s1294_s8 + $0x10] sm:$0xff] %v629_v45 }

</bundles_post_ra>
